<compile_context>
chip_gen: v7x
topology: tpu7x:2x2x1
jax: 0.10.0
libtpu: 0.0.40
codegen_flags: <defaults>
</compile_context>

<pallas_src>
import jax
import jax.numpy as jnp
from jax.experimental import pallas as pl
from jax.experimental.pallas import tpu as pltpu

DILS = ((1, 1), (3, 1), (1, 3), (3, 3))                       # branch dilations
OFFSETS = tuple((dr, dc) for dr in (-3, -1, 0, 1, 3)          # union of all
               for dc in (-3, -1, 0, 1, 3))                   # branch taps (25)
TAPS3 = tuple((kh - 1, kw - 1) for kh in range(3) for kw in range(3))


# ----------------------------------------------------------------------------
# Kernel A: fused lateral1|lateral2 1x1 convs + per-batch channel sums
# ----------------------------------------------------------------------------
def _make_lateral_kernel(HW, TM):
    partial_tile = (HW % TM) != 0

    def kernel(x_ref, w_ref, b_ref, o_ref, psum_ref):
        m = pl.program_id(1)
        # Contract Cin (axis 0 of the NCHW block) directly on the MXU operand
        # path -- no materialised transpose of the x tile.
        res = jax.lax.dot_general(
            x_ref[0], w_ref[...],
            dimension_numbers=(((0,), (0,)), ((), ())),
            preferred_element_type=jnp.float32) + b_ref[...]
        o_ref[0] = res.astype(o_ref.dtype)

        # Per-batch channel sums for the ChannelGate global pool, accumulated
        # across the (arbitrary) row-tile axis so lat12 is never re-read.
        @pl.when(m == 0)
        def _():
            psum_ref[...] = jnp.zeros_like(psum_ref)

        if partial_tile:   # mask padded rows of the last (partial) tile
            rows = m * TM + jax.lax.broadcasted_iota(jnp.int32, (TM, 1), 0)
            res = jnp.where(rows < HW, res, 0.0)
        prev = psum_ref[0, 0:1, :]
        psum_ref[0, 0:1, :] = prev + jnp.sum(res, axis=0, keepdims=True)

    return kernel


def _row_tile(HW):
    cands = (2048, 1024, 512, 256, 128)
    for t in cands:                       # prefer >= 2 pipeline steps per batch
        if 2 * t <= HW and HW % t == 0:
            return t
    for t in cands:
        if HW % t == 0:
            return t
    return HW if HW <= 2048 else 512      # cdiv fallback (masked partial tile)


# ----------------------------------------------------------------------------
# Branch-weight packing: 4 dilated 3x3 convs -> 25 union-of-offset matmuls
# ----------------------------------------------------------------------------
def pack_branch_weights(sg_bw):
    """(2, 4, 9, Cin, Cb) per-branch taps -> (2, 25, Cin, 4*Cb) merged taps."""
    G, _, _, Cin, Cb = sg_bw.shape
    mats = []
    for (dr, dc) in OFFSETS:
        per_branch = []
        for bi, (dh, dw) in enumerate(DILS):
            if dr % dh == 0 and abs(dr) <= dh and dc % dw == 0 and abs(dc) <= dw:
                kh, kw = dr // dh + 1, dc // dw + 1
                per_branch.append(sg_bw[:, bi, kh * 3 + kw])
            else:
                per_branch.append(jnp.zeros((G, Cin, Cb), sg_bw.dtype))
        mats.append(jnp.concatenate(per_branch, axis=-1))
    return jnp.stack(mats, axis=1)


# ----------------------------------------------------------------------------
# Strip-size / VMEM budgeting for kernel B
# ----------------------------------------------------------------------------
def _estimate_b_vmem(TH, H, W, C, Cm, halo, n_up):
    f, c2 = 4, 2 * C
    lat = TH * W * c2 * f * 2 + (2 * 8 * W * c2 * f * 2 if halo else 0)
    outs = 4 * TH * W * C * f * 2
    ups = n_up * (TH * W * C * f * 2 + (2 * 8 * W * C * f * 2 if halo else 0))
    scr = (2 * (TH + 10) * (W + 6) * C + (TH + 4) * (W + 2) * Cm
           + (TH + 2) * (W + 2) * C) * f
    wts = (2 * 25 * C * Cm + 2 * 9 * Cm * Cm + 2 * 9 * C * C
           + 6 * Cm + 6 * C) * f * 2
    return lat + outs + ups + scr + wts


def _pick_strip(H, W, C, Cm, n_up, budget=36 * 2**20):
    cands = [d for d in range(8, H + 1, 8) if H % d == 0]
    if not cands:
        return H, False                      # tiny/odd H: single whole-image strip
    fit = [d for d in cands
           if _estimate_b_vmem(d, H, W, C, Cm, d < H, n_up) <= budget]
    if not fit:
        return cands[0], cands[0] < H        # best effort: smallest strip
    multi = [d for d in fit if d < H]        # prefer >= 2 strips (pipeline depth)
    if multi:
        return max(multi), True
    return max(fit), False


# ----------------------------------------------------------------------------
# Kernel B: SpatialGates + SFIM combine + fuse convs, row-strip tiled with halo
# ----------------------------------------------------------------------------
def _make_main_kernel(H, W, C, Cm, TH, HALO_R, has_halo, has_up1, has_up2,
                      pack_lanes):
    R_EXT = TH + 10      # lat rows  [r0-5, r0+TH+5)
    R_CAT = TH + 4       # cat rows  [r0-2, r0+TH+2)
    R_MID = TH + 2       # sens rows [r0-1, r0+TH+1)

    def kernel(*refs):
        it = iter(refs)
        latm = next(it)
        lata = next(it) if has_halo else None
        latb = next(it) if has_halo else None
        cg_ref = next(it)
        sg_wm, sg_c0w, sg_s, sg_t, sg_c1w, fz_w, fz_b = (next(it)
                                                         for _ in range(7))
        nup_refs = 3 if has_halo else 1
        up1 = tuple(next(it) for _ in range(nup_refs)) if has_up1 else None
        up2 = tuple(next(it) for _ in range(nup_refs)) if has_up2 else None
        out1_ref, lat1_ref, out2_ref, lat2_ref = (next(it) for _ in range(4))
        padp, padr, padc, pad1 = (next(it) for _ in range(4))

        s = pl.program_id(1)
        nlast = pl.num_programs(1) - 1
        r0 = s * TH

        def row_mask(x, off):
            # zero rows whose logical image row is outside [0, H)
            rows = r0 + off + jax.lax.broadcasted_iota(
                jnp.int32, (x.shape[0], 1, 1), 0)
            return jnp.where((rows >= 0) & (rows < H), x, 0.0)

        def conv_taps(pad_ref, taps, rows_out, prow, pcol, wsel):
            # "same" conv accumulated from a zero-padded VMEM scratch buffer.
            # Windows stay (rows, W, Cin); the (rows*W, Cin) reshape keeps the
            # lane dim unchanged (layout-preserving when W % 8 == 0) and feeds
            # a plain 2-D MXU dot.
            acc = None
            for t, (dr, dc) in enumerate(taps):
                win = pad_ref[prow + dr:prow + dr + rows_out,
                              pcol + dc:pcol + dc + W, :]
                win2 = win.reshape(rows_out * W, win.shape[-1])
                d = jnp.dot(win2, wsel(t), preferred_element_type=jnp.float32)
                acc = d if acc is None else acc + d
            return acc.reshape(rows_out, W, -1)

        zcol3 = jnp.zeros((R_EXT, 3, C), jnp.float32)
        zcol1c = jnp.zeros((R_CAT, 1, Cm), jnp.float32)
        zcol1f = jnp.zeros((R_MID, 1, C), jnp.float32)

        # ---- SpatialGate per gate (p then r): merged branch convs -> 3x3 ->
        #      BN/ReLU -> 1x1 to a single map (never stored to HBM).
        sp = []
        for g, pad in ((0, padp), (1, padr)):
            cs = g * C
            if has_halo:
                above = jnp.where(s > 0,
                                  lata[0, HALO_R - 5:HALO_R, :, cs:cs + C], 0.0)
                below = jnp.where(s < nlast,
                                  latb[0, 0:5, :, cs:cs + C], 0.0)
            else:
                above = jnp.zeros((5, W, C), latm.dtype)
                below = jnp.zeros((5, W, C), latm.dtype)
            # Interior rows are always fully overwritten; only the thin column
            # halos are re-zeroed (cheap).  Scratch is per-core and starts
            # uninitialised, so a one-time pl.when(first) zero is not
            # megacore-safe -- hence per-step column-halo writes.
            pad[0:5, 3:3 + W, :] = above.astype(jnp.float32)
            pad[5:5 + TH, 3:3 + W, :] = latm[0, :, :, cs:cs + C].astype(jnp.float32)
            pad[5 + TH:, 3:3 + W, :] = below.astype(jnp.float32)
            pad[:, 0:3, :] = zcol3
            pad[:, 3 + W:, :] = zcol3

            cat = conv_taps(pad, OFFSETS, R_CAT, 3, 3,
                            lambda t, g=g: sg_wm[g, t])
            cat = row_mask(cat, -2)          # zero padding rows for the 3x3 conv
            padc[:, 1:1 + W, :] = cat
            padc[:, 0:1, :] = zcol1c
            padc[:, 1 + W:, :] = zcol1c
            hh = conv_taps(padc, TAPS3, R_MID, 1, 1,
                           lambda t, g=g: sg_c0w[g, t])
            hh = jnp.maximum(hh * sg_s[g] + sg_t[g], 0.0)     # BN(eval) + ReLU
            sp.append(jnp.sum(hh * sg_c1w[g], axis=-1, keepdims=True))

        # ---- SFIM combine (channel gates precomputed from the global means).
        cgp = cg_ref[0, 0:1, :]
        cgr = cg_ref[0, 1:2, :]
        atten = cgp * sp[0] + cgr * sp[1]                      # (R_MID, W, C)
        at = jax.nn.sigmoid(atten)
        # proc == 1.0 => thres == 1.0 => at_point == at_edge == at.
        # TODO(synk): arctan/cos edge-sharpening branch (0.5 < proc < 0.6 only).

        def up_pieces(u):
            if u is None:
                return None, None
            if has_halo:
                um_ref, ua_ref, ub_ref = u
                above = jnp.where(s > 0, ua_ref[0, HALO_R - 1:HALO_R, :, :], 0.0)
                below = jnp.where(s < nlast, ub_ref[0, 0:1, :, :], 0.0)
                main = um_ref[0]
                ext = jnp.concatenate([above, main, below], axis=0)
            else:
                main = u[0][0]
                zrow = jnp.zeros((1, W, C), main.dtype)
                ext = jnp.concatenate([zrow, main, zrow], axis=0)
            return ext, main

        def store(ref, val):                 # lane-dense store when C < 128
            if pack_lanes:
                ref[0] = val.reshape(TH, W * C).astype(ref.dtype)
            else:
                ref[0] = val.astype(ref.dtype)

        # ---- Epilogue: finish the p gate completely (fuse1 -> out1, lat1)
        #      before building the r-gate sensitive map (one live map at a time).
        for g, pad, up, o_ref, l_ref in ((0, padp, up1, out1_ref, lat1_ref),
                                         (1, padr, up2, out2_ref, lat2_ref)):
            x_ext = pad[4:4 + R_MID, 3:3 + W, :]               # rows [r0-1, r0+TH+1)
            sens = at * x_ext + x_ext + atten
            lat_out = pad[5:5 + TH, 3:3 + W, :]                # rows [r0, r0+TH)
            u_ext, u_main = up_pieces(up)
            if u_ext is not None:
                sens = sens + u_ext
                lat_out = lat_out + u_main
            store(l_ref, lat_out)
            sens = row_mask(sens, -1)        # zero padding rows for the fuse conv
            pad1[:, 1:1 + W, :] = sens
            pad1[:, 0:1, :] = zcol1f
            pad1[:, 1 + W:, :] = zcol1f
            out = conv_taps(pad1, TAPS3, TH, 1, 1,
                            lambda t, g=g: fz_w[g, t])
            store(o_ref, out + fz_b[g])

    return kernel


# ----------------------------------------------------------------------------
# Forward wrapper
# ----------------------------------------------------------------------------
def fpn_block_forward(params, x_nchw, upsampled1=None, upsampled2=None, *,
                      lat_dtype=jnp.float32, nchw_outputs=True):
    x_nchw = x_nchw.astype(jnp.float32)
    B, Cin, H, W = x_nchw.shape
    C2 = params['lat_w'].shape[1]
    C = C2 // 2
    Cm = params['sg_c0w'].shape[-1]
    HW = H * W

    # ---- Kernel A: fused lateral matmul + pooled channel sums ---------------
    x_flat = x_nchw.reshape(B, Cin, HW)            # free reshape, no transpose
    TM = _row_tile(HW)
    n_tiles = (HW + TM - 1) // TM
    lat12, psum = pl.pallas_call(
        _make_lateral_kernel(HW, TM),
        out_shape=(jax.ShapeDtypeStruct((B, HW, C2), lat_dtype),
                   jax.ShapeDtypeStruct((B, 8, C2), jnp.float32)),
        grid=(B, n_tiles),
        in_specs=[pl.BlockSpec((1, Cin, TM), lambda b, m: (b, 0, m)),
                  pl.BlockSpec((Cin, C2), lambda b, m: (0, 0)),
                  pl.BlockSpec((1, C2), lambda b, m: (0, 0))],
        out_specs=(pl.BlockSpec((1, TM, C2), lambda b, m: (b, m, 0)),
                   pl.BlockSpec((1, 8, C2), lambda b, m: (b, 0, 0))),
        compiler_params=pltpu.CompilerParams(
            # row-tile axis is "arbitrary" because the pooled-sum output is
            # accumulated across it (ChannelGate global pool, no lat12 re-read).
            dimension_semantics=("parallel", "arbitrary"),
            vmem_limit_bytes=48 * 1024 * 1024),
    )(x_flat, params['lat_w'], params['lat_b'])
    lat12 = lat12.reshape(B, H, W, C2)             # free reshape (contiguous)

    # ---- ChannelGate MLPs on the pooled means (tiny, per batch) -------------
    pooled = psum[:, 0, :] / float(HW)             # (B, 2C) global means (f32)
    cg_list = []
    for g, pg in enumerate((pooled[:, :C], pooled[:, C:])):
        h = pg @ params['cg_fc1_w'][g] + params['cg_fc1_b'][g]
        h = jnp.maximum(h * params['cg_bn_s'][g] + params['cg_bn_t'][g], 0.0)
        cg_list.append(h @ params['cg_fc2_w'][g] + params['cg_fc2_b'][g])
    cg = jnp.stack(cg_list, axis=1).astype(jnp.float32)       # (B, 2, C)

    # ---- Kernel B setup ------------------------------------------------------
    has_up1 = upsampled1 is not None
    has_up2 = upsampled2 is not None
    n_up = int(has_up1) + int(has_up2)
    TH, has_halo = _pick_strip(H, W, C, Cm, n_up)
    HALO_R = 8 if has_halo else H
    KA = TH // HALO_R
    NH = max(H // HALO_R, 1)
    n_strips = H // TH
    pack_lanes = (C % 128) != 0

    ups_nhwc = []
    if has_up1:
        ups_nhwc.append(jnp.transpose(upsampled1.astype(jnp.float32), (0, 2, 3, 1)))
    if has_up2:
        ups_nhwc.append(jnp.transpose(upsampled2.astype(jnp.float32), (0, 2, 3, 1)))
    # TODO(synk): fold the upsampled NCHW->NHWC relayout into kernel B to drop
    # these XLA passes (needs an in-kernel 3-D transpose).

    sg_wm = pack_branch_weights(params['sg_bw'])
    weight_args = [sg_wm, params['sg_c0w'], params['sg_bn_s'],
                   params['sg_bn_t'], params['sg_c1w'],
                   params['fuse_w'], params['fuse_b']]

    def const_spec(a):
        return pl.BlockSpec(a.shape, lambda b, s, _z=(0,) * a.ndim: _z)

    def main_spec(ch):
        return pl.BlockSpec((1, TH, W, ch), lambda b, s: (b, s, 0, 0))

    def above_spec(ch):
        return pl.BlockSpec((1, HALO_R, W, ch),
                            lambda b, s: (b, jnp.maximum(s * KA - 1, 0), 0, 0))

    def below_spec(ch):
        return pl.BlockSpec((1, HALO_R, W, ch),
                            lambda b, s: (b, jnp.minimum((s + 1) * KA, NH - 1),
                                          0, 0))

    in_specs = [main_spec(C2)]
    inputs = [lat12]
    if has_halo:
        in_specs += [above_spec(C2), below_spec(C2)]
        inputs += [lat12, lat12]
    in_specs += [pl.BlockSpec((1, 2, C), lambda b, s: (b, 0, 0))]
    inputs += [cg]
    in_specs += [const_spec(a) for a in weight_args]
    inputs += weight_args
    for u in ups_nhwc:
        in_specs.append(main_spec(C))
        inputs.append(u)
        if has_halo:
            in_specs += [above_spec(C), below_spec(C)]
            inputs += [u, u]

    if pack_lanes:   # lane-dense output slab when C is not a multiple of 128
        out_sds = jax.ShapeDtypeStruct((B, H, W * C), jnp.float32)
        out_spec = pl.BlockSpec((1, TH, W * C), lambda b, s: (b, s, 0))
    else:
        out_sds = jax.ShapeDtypeStruct((B, H, W, C), jnp.float32)
        out_spec = pl.BlockSpec((1, TH, W, C), lambda b, s: (b, s, 0, 0))

    kernel = _make_main_kernel(H, W, C, Cm, TH, HALO_R, has_halo,
                               has_up1, has_up2, pack_lanes)

    out1, lat1, out2, lat2 = pl.pallas_call(
        kernel,
        out_shape=(out_sds,) * 4,
        grid=(B, n_strips),
        in_specs=in_specs,
        out_specs=(out_spec,) * 4,
        scratch_shapes=[
            pltpu.VMEM((TH + 10, W + 6, C), jnp.float32),   # lat_p strip, padded 3
            pltpu.VMEM((TH + 10, W + 6, C), jnp.float32),   # lat_r strip, padded 3
            pltpu.VMEM((TH + 4, W + 2, Cm), jnp.float32),   # branch concat, padded 1
            pltpu.VMEM((TH + 2, W + 2, C), jnp.float32),    # sensitive, padded 1
        ],
        compiler_params=pltpu.CompilerParams(
            dimension_semantics=("parallel", "parallel"),
            vmem_limit_bytes=56 * 1024 * 1024),             # < v7x 64 MiB physical
    )(*inputs)

    def finish(a):
        a = a.reshape(B, H, W, C)                           # free reshape
        return jnp.transpose(a, (0, 3, 1, 2)) if nchw_outputs else a
    # TODO(synk): pass nchw_outputs=False when consumers accept NHWC to drop
    # these four XLA transpose passes.

    return finish(out1), finish(lat1), finish(out2), finish(lat2)


# ----------------------------------------------------------------------------
# Deterministic parameter initialization (shapes per the module's __init__)
# ----------------------------------------------------------------------------
def init_params(key, C_in, C_out):
    keys = iter(jax.random.split(key, 64))

    def w(shape, scale=0.1):
        return jax.random.normal(next(keys), shape, jnp.float32) * scale

    C = C_out
    Cr = C // 16          # ChannelGate hidden
    Cb = C // 16          # SpatialGate per-branch channels
    Cm = C // 4           # SpatialGate concat channels

    def bn_fold(gamma, beta, rm=0.0, rv=1.0, eps=1e-5):
        s = gamma / jnp.sqrt(rv + eps)
        t = beta - rm * s
        return s, t

    cg_fc1_w = jnp.stack([w((C, Cr)), w((C, Cr))])
    cg_fc1_b = jnp.stack([w((1, Cr)), w((1, Cr))])
    cg_g = jnp.stack([1.0 + w((1, Cr)), 1.0 + w((1, Cr))])
    cg_beta = jnp.stack([w((1, Cr)), w((1, Cr))])
    cg_s, cg_t = bn_fold(cg_g, cg_beta)
    cg_fc2_w = jnp.stack([w((Cr, C)), w((Cr, C))])
    cg_fc2_b = jnp.stack([w((1, C)), w((1, C))])

    # Spatial gates: per-branch conv weights in tap-major matmul layout
    # (gate, branch, tap=kh*3+kw, Cin, Cout); BasicConv2d has no bias.
    sg_bw = jnp.stack([jnp.stack([w((9, C, Cb)) for _ in range(4)])
                       for _ in range(2)])
    sg_c0w = jnp.stack([w((9, Cm, Cm)), w((9, Cm, Cm))])
    sg_g = jnp.stack([1.0 + w((1, Cm)), 1.0 + w((1, Cm))])
    sg_beta = jnp.stack([w((1, Cm)), w((1, Cm))])
    sg_s, sg_t = bn_fold(sg_g, sg_beta)
    sg_c1w = jnp.stack([w((1, Cm)), w((1, Cm))])

    fuse_w = jnp.stack([w((9, C, C)), w((9, C, C))])
    fuse_b = jnp.stack([w((1, C)), w((1, C))])

    # Fused lateral1|lateral2 weights: (Cin, 2*Cout), bias (1, 2*Cout).
    lat_w = jnp.concatenate([w((C_in, C)), w((C_in, C))], axis=1)
    lat_b = jnp.concatenate([w((1, C)), w((1, C))], axis=1)

    return dict(lat_w=lat_w, lat_b=lat_b,
                cg_fc1_w=cg_fc1_w, cg_fc1_b=cg_fc1_b,
                cg_bn_s=cg_s, cg_bn_t=cg_t,
                cg_fc2_w=cg_fc2_w, cg_fc2_b=cg_fc2_b,
                sg_bw=sg_bw, sg_c0w=sg_c0w,
                sg_bn_s=sg_s, sg_bn_t=sg_t, sg_c1w=sg_c1w,
                fuse_w=fuse_w, fuse_b=fuse_b)


if __name__ == "__main__":
    C_in, C_out = 16, 32
    B, H, W = 2, 16, 16

    key = jax.random.PRNGKey(0)
    kp, kx, ku1, ku2 = jax.random.split(key, 4)
    params = init_params(kp, C_in, C_out)
    x = jax.random.normal(kx, (B, C_in, H, W), jnp.float32)

    # Base path: no residuals, f32 lat12 (PyTorch-parity path).  H=16 with an
    # 8-row strip exercises the halo + boundary-mask logic of kernel B.
    outs = fpn_block_forward(params, x)
    for t in outs:
        jax.block_until_ready(t)
        assert t.shape == (B, C_out, H, W)
        assert bool(jnp.all(jnp.isfinite(t)))

    # Optional residuals + bf16 lat12 intermediate.
    u1 = jax.random.normal(ku1, (B, C_out, H, W), jnp.float32)
    u2 = jax.random.normal(ku2, (B, C_out, H, W), jnp.float32)
    outs2 = fpn_block_forward(params, x, u1, u2, lat_dtype=jnp.bfloat16)
    for t in outs2:
        jax.block_until_ready(t)
        assert t.shape == (B, C_out, H, W)
        assert bool(jnp.all(jnp.isfinite(t)))

    print("KERNEL_OK")
</pallas_src>

<mosaic_0001>
module attributes {stable_mosaic.version = 11 : i64} {
  func.func @kernel(%arg0: i32, %arg1: i32, %arg2: memref<1x16x128xf32, #tpu.memory_space<vmem>>, %arg3: memref<16x64xf32, #tpu.memory_space<vmem>>, %arg4: memref<1x64xf32, #tpu.memory_space<vmem>>, %arg5: memref<1x128x64xf32, #tpu.memory_space<vmem>>, %arg6: memref<1x8x64xf32, #tpu.memory_space<vmem>>) attributes {dimension_semantics = [#tpu.dimension_semantics<parallel>, #tpu.dimension_semantics<arbitrary>], iteration_bounds = array<i64: 2, 2>, scalar_prefetch = 0 : i64, scratch_operands = 0 : i64, tpu.core_type = #tpu.core_type<tc>, window_params = [{transform_indices = @transform_0, window_bounds = array<i64: 1, 16, 128>}, {pipeline_mode = #tpu.pipeline_mode<synchronous>, transform_indices = @transform_1, window_bounds = array<i64: 16, 64>}, {pipeline_mode = #tpu.pipeline_mode<synchronous>, transform_indices = @transform_2, window_bounds = array<i64: 1, 64>}, {transform_indices = @transform_3, window_bounds = array<i64: 1, 128, 64>}, {transform_indices = @transform_4, window_bounds = array<i64: 1, 8, 64>}]} {
    %c0 = arith.constant 0 : index
    %c0_0 = arith.constant 0 : index
    %c0_1 = arith.constant 0 : index
    %0 = vector.load %arg2[%c0, %c0_0, %c0_1] : memref<1x16x128xf32, #tpu.memory_space<vmem>>, vector<1x16x128xf32>
    %1 = vector.shape_cast %0 : vector<1x16x128xf32> to vector<16x128xf32>
    %c0_2 = arith.constant 0 : index
    %c0_3 = arith.constant 0 : index
    %2 = vector.load %arg3[%c0_2, %c0_3] : memref<16x64xf32, #tpu.memory_space<vmem>>, vector<16x64xf32>
    %cst = arith.constant dense<0.000000e+00> : vector<128x64xf32>
    %3 = tpu.matmul %1, %2, %cst {dimension_numbers = #tpu.dot_dimension_numbers<[0], [0], [1], [1], [0, 1, 1, 1], [], []>} : vector<16x128xf32>, vector<16x64xf32>, vector<128x64xf32> -> vector<128x64xf32>
    %c0_4 = arith.constant 0 : index
    %c0_5 = arith.constant 0 : index
    %4 = vector.load %arg4[%c0_4, %c0_5] : memref<1x64xf32, #tpu.memory_space<vmem>>, vector<1x64xf32>
    %5 = vector.broadcast %4 : vector<1x64xf32> to vector<128x64xf32>
    %6 = arith.addf %3, %5 : vector<128x64xf32>
    %c0_6 = arith.constant 0 : index
    %c0_7 = arith.constant 0 : index
    %c0_8 = arith.constant 0 : index
    %7 = vector.load %arg5[%c0_6, %c0_7, %c0_8] : memref<1x128x64xf32, #tpu.memory_space<vmem>>, vector<1x128x64xf32>
    %8 = vector.shape_cast %7 : vector<1x128x64xf32> to vector<128x64xf32>
    %9 = vector.shape_cast %6 : vector<128x64xf32> to vector<1x128x64xf32>
    tpu.vector_store %arg5[%c0_6, %c0_7, %c0_8], %9 {strides = array<i32>} : memref<1x128x64xf32, #tpu.memory_space<vmem>>, vector<1x128x64xf32>,
    %c0_i32 = arith.constant 0 : i32
    %10 = arith.cmpi eq, %arg1, %c0_i32 : i32
    %11 = arith.extui %10 : i1 to i32
    %c0_i32_9 = arith.constant 0 : i32
    %12 = arith.cmpi ne, %11, %c0_i32_9 : i32
    scf.if %12 {
      %cst_17 = arith.constant 0.000000e+00 : f32
      %21 = vector.broadcast %cst_17 : f32 to vector<1x8x64xf32>
      %c0_18 = arith.constant 0 : index
      %c0_19 = arith.constant 0 : index
      %c0_20 = arith.constant 0 : index
      %22 = vector.load %arg6[%c0_18, %c0_19, %c0_20] : memref<1x8x64xf32, #tpu.memory_space<vmem>>, vector<1x8x64xf32>
      tpu.vector_store %arg6[%c0_18, %c0_19, %c0_20], %21 {strides = array<i32>} : memref<1x8x64xf32, #tpu.memory_space<vmem>>, vector<1x8x64xf32>,
    } else {
    }
    %c0_10 = arith.constant 0 : index
    %c0_11 = arith.constant 0 : index
    %c0_12 = arith.constant 0 : index
    %13 = vector.load %arg6[%c0_10, %c0_11, %c0_12] : memref<1x8x64xf32, #tpu.memory_space<vmem>>, vector<1x1x64xf32>
    %14 = vector.shape_cast %13 : vector<1x1x64xf32> to vector<1x64xf32>
    %cst_13 = arith.constant dense<0.000000e+00> : vector<64xf32>
    %15 = vector.multi_reduction <add>, %6, %cst_13 [0] : vector<128x64xf32> to vector<64xf32>
    %16 = vector.shape_cast %15 : vector<64xf32> to vector<1x64xf32>
    %17 = arith.addf %14, %16 : vector<1x64xf32>
    %c0_14 = arith.constant 0 : index
    %c0_15 = arith.constant 0 : index
    %c0_16 = arith.constant 0 : index
    %18 = vector.load %arg6[%c0_14, %c0_15, %c0_16] : memref<1x8x64xf32, #tpu.memory_space<vmem>>, vector<1x1x64xf32>
    %19 = vector.shape_cast %18 : vector<1x1x64xf32> to vector<1x64xf32>
    %20 = vector.shape_cast %17 : vector<1x64xf32> to vector<1x1x64xf32>
    tpu.vector_store %arg6[%c0_14, %c0_15, %c0_16], %20 {strides = array<i32>} : memref<1x8x64xf32, #tpu.memory_space<vmem>>, vector<1x1x64xf32>,
    return
  }
  func.func @transform_0(%arg0: i32, %arg1: i32) -> (i32, i32, i32) {
    %c0_i32 = arith.constant 0 : i32
    %c0_i32_0 = arith.constant 0 : i32
    return %arg0, %c0_i32, %arg1 : i32, i32, i32
  }
  func.func @transform_1(%arg0: i32, %arg1: i32) -> (i32, i32) {
    %c0_i32 = arith.constant 0 : i32
    %c0_i32_0 = arith.constant 0 : i32
    %c0_i32_1 = arith.constant 0 : i32
    return %c0_i32, %c0_i32_0 : i32, i32
  }
  func.func @transform_2(%arg0: i32, %arg1: i32) -> (i32, i32) {
    %c0_i32 = arith.constant 0 : i32
    %c0_i32_0 = arith.constant 0 : i32
    %c0_i32_1 = arith.constant 0 : i32
    return %c0_i32, %c0_i32_0 : i32, i32
  }
  func.func @transform_3(%arg0: i32, %arg1: i32) -> (i32, i32, i32) {
    %c0_i32 = arith.constant 0 : i32
    %c0_i32_0 = arith.constant 0 : i32
    return %arg0, %arg1, %c0_i32 : i32, i32, i32
  }
  func.func @transform_4(%arg0: i32, %arg1: i32) -> (i32, i32, i32) {
    %c0_i32 = arith.constant 0 : i32
    %c0_i32_0 = arith.constant 0 : i32
    %c0_i32_1 = arith.constant 0 : i32
    return %arg0, %c0_i32, %c0_i32_0 : i32, i32, i32
  }
}

</mosaic_0001>

<bundles_post_ra>
// kernel: tpu_custom_call.1
= control target key start
LH: loop header
LB: loop body
LE: loop exit
PB: predicated region body
PF: predicated region fallthrough
CT: control target
= control target key end

     0   :  { %s1508_s0 = inlined_call_operand.hbm [shape: f32[2,16,256], index: 0, kind: input, shape index: {}]   ;;  %s1509_s1 = inlined_call_operand.hbm [shape: f32[16,64], index: 1, kind: input, shape index: {}]   ;;  %s1510_s2 = inlined_call_operand.vmem [shape: f32[1,64], index: 2, kind: input, shape index: {}]   ;;  %s1511_s3 = inlined_call_operand.vmem [shape: f32[2,256,64], index: 3, kind: output, shape index: {0}]   ;;  %s1512_s4 = inlined_call_operand.hbm [shape: f32[2,8,64], index: 4, kind: output, shape index: {1}]  }
   0x1   :  { %1528 = sst [smem:[#allocation17_spill]] %s1509_s1 }
   0x2   :  { %10 = vsyncpa [#allocation3], 0 }
   0x3   :  { %12 = vsyncpa [#allocation3 + $0x1], 0 }
   0x4   :  { %13 = vsyncpa [#allocation6], 0 }
   0x5   :  { %14 = vsyncpa [#allocation4], 0 }
   0x6   :  { %16 = vsyncpa [#allocation4 + $0x1], 0  ;;  %s1152_s15 = smov 0   ;;  %s1154_s16 = smov 0  }
   0x7   :  { %s1156_s17 = smov 0   ;;  %s1158_s18 = smov 0  }
   0x8   :  { %s1160_s19 = smov 0   ;;  %s1162_s20 = smov 0  }
   0x9   :  { %s1164_s21 = smov 0   ;;  %s1166_s22 = smov 0  }
   0xa   :  { %s1168_s23 = smov 0   ;;  %s1170_s24 = smov 0  }
   0xb   :  { %s1172_s25 = smov 0  }
   0xc LB: > { %1529 = sst [smem:[#allocation11_spill]] %s1078_s15  ;;  %s727_s26 = sadd.s32 4294967295, %s1118_s25   ;;  %s1118_s25 = sphi %s1172_s25, %s22_s25   ;;  %s1114_s24 = sphi %s1170_s24, %s1568_s24   ;;  %s1110_s23 = sphi %s1168_s23, %s1559_s23   ;;  %s1106_s22 = sphi %s1166_s22, %s1567_s22   ;;  %s1102_s21 = sphi %s1164_s21, %s1558_s21   ;;  %s1098_s20 = sphi %s1162_s20, %s1566_s20   ;;  %s1094_s19 = sphi %s1160_s19, %s1565_s19   ;;  %s1090_s18 = sphi %s1158_s18, %s1564_s18   ;;  %s1086_s17 = sphi %s1156_s17, %s1563_s17   ;;  %s1082_s16 = sphi %s1154_s16, %s1562_s16   ;;  %s1078_s15 = sphi %s1152_s15, %s1561_s15  }
   0xd   : > { %1530 = sst [smem:[#allocation12_spill]] %s1110_s23  ;;  %s728_s27 = sadd.s32 4294967294, %s1118_s25  }
   0xe   : > { %1531 = sst [smem:[#allocation13_spill]] %s1118_s25  ;;  %p50_p0 = scmp.ne.s32.totalorder %s1098_s20, %s1094_s19 }
   0xf   : > { %p51_p1 = scmp.eq.s32.totalorder %s1118_s25, 0  ;;  %p56_p2 = scmp.ne.s32.totalorder %s1094_s19, %s1090_s18 }
  0x10   : > { %p1212_p3 = scmp.eq.s32.totalorder %s727_s26, 0  ;;  %p149_p5 = scmp.ne.s32.totalorder %s1086_s17, %s1082_s16 }
  0x11   : > { %p1217_p4 = por %p51_p1, %p50_p0  ;;  %p150_p7 = scmp.eq.s32.totalorder %s727_s26, 3 }
  0x12   : > { %s1532_s29 = scalar_select %p1212_p3, 1, 0 }
  0x13   : > { %p1225_p6 = por %p1212_p3, %p56_p2  ;;  %p155_p8 = scmp.ne.s32.totalorder %s1082_s16, %s1078_s15 }
  0x14   : > { %p156_p9 = scmp.eq.s32.totalorder %s728_s27, 3  ;;  %p1231_p10 = por %p150_p7, %p149_p5 }
  0x15   : > { %s1534_s6 = scalar_select %p1225_p6, 1, 0 }
  0x16   : > { %s1535_s7 = scalar_select %p1231_p10, 1, 0 }
  0x17   : > { %p729_p11 = scmp.ge.s32.totalorder %s1118_s25, 1  ;;  %p1236_p12 = por %p156_p9, %p155_p8 }
  0x18   : > { %p163_p13 = scmp.lt.s32.totalorder %s1118_s25, 5  ;;  %s1120_s10 = smov [#allocation5]  }
  0x19   : > { %s1536_s8 = scalar_select %p1236_p12, 1, 0 }
  0x1a   : > { %p1241_p0 = pnand %p729_p11, %p163_p13  ;;  %s175_s11 = sshll.u32 %s1120_s10, 4  ;;  %s176_s11 = int_to_ptr.vmem [resolvable:$true] %s175_s11 }
  0x1b   : > { %1537 = sst [smem:[#allocation14_spill]] %s1536_s8  ;;  %p837_p2 = scmp.lt.s32.totalorder %s1118_s25, 4 }
  0x1c   : > { %s1538_s9 = scalar_select %p1241_p0, 1, 0 }
  0x1d   : > { %p824_p1 = pneg %p1241_p0  ;;  %p1256_p7 = pnand %p837_p2, %p1217_p4 }
  0x1e   : > { %s1541_s1 = sld [smem:[#allocation17_spill]] }
  0x1f   : > { %p1250_p5 = pnand %p824_p1, %p1212_p3 }
  0x20   : > { %s1540_s13 = scalar_select %p1256_p7, 1, 0 }
  0x21   : > { %p936_p9 = pneg %p1250_p5 }
  0x24   : > { %s934_s26 = scalar_lea.hbm %s1541_s1, 256 }
  0x25   : > { %p935_p8 = scmp.ne.s32.totalorder %s1541_s1, %s934_s26  ;;  %p941_p1 = scmp.lt.u32.totalorder %s934_s26, %s1541_s1 }
  0x27   : > { %p937_p11 = pnand %p936_p9, %p935_p8 }
  0x29   : > { %p938_p13 = pneg %p937_p11 }
  0x2b   : > { %p943_p4 = pnand %p941_p1, %p938_p13 }
  0x2d   : > { %946 = shalt.err (!%p943_p4)
}
  0x2e   : > { %s947_s5 = scalar_lea.vmem %s176_s11, 256  ;;  %p955_p3 = scmp.lt.s32.totalorder %s176_s11, %s176_s11 }
  0x2f   : > { %p948_p2 = scmp.ne.s32.totalorder %s176_s11, %s947_s5  ;;  %p956_p6 = scmp.lt.s32.totalorder %s947_s5, %s947_s5 }
  0x31   : > { %p950_p12 = pnand %p948_p2, %p936_p9  ;;  %p957_p0 = por %p956_p6, %p955_p3 }
  0x33   : > { %p951_p10 = pneg %p950_p12 }
  0x35   : > { %p958_p7 = pnand %p957_p0, %p951_p10 }
  0x37   : > { %961 = shalt.err (!%p958_p7)
}
  0x38   : > { %s1521_s14 = smov 128   ;;  %s1522_s28 = smov 8  }
  0x39   : > { %827 = dma.hbm_to_vmem [thread:$0]  (!%p1250_p5), %s1541_s1, 256, %s176_s11, [#allocation6], %s1521_s14, %s1521_s14, %s1522_s28  }
  0x3a   : > { %s31_s26 = sadd.s32 1, %s1110_s23  ;;  %s34_s27 = sadd.s32 1, %s1114_s24 }
  0x3b   : > { %p32_p3 = scmp.ge.s32.totalorder %s31_s26, 2  ;;  %s192_s10 = sand.u32 1, %s1098_s20  }
  0x3c   : > { %s732_s5 = sshll.u32 %s192_s10, 4  ;;  %s733_s8 = sshll.u32 %s1114_s24, 2 }
  0x3d   : > { %s1570_s26 = smov (%p32_p3, %s31_s26), 0  ;;  %s1572_s27 = smov (!%p32_p3, %s34_s27), %s1114_s24 }
  0x3e   : > { %1542 = sst [smem:[#allocation15_spill]] %s1570_s26  ;;  %s39_s12 = ssub.s32 %s1110_s23, %s1570_s26 }
  0x3f   : > { %p36_p6 = scmp.ge.s32.totalorder %s1572_s27, 2  ;;  %s201_s15 = sadd.s32 %s1110_s23, %s733_s8 }
  0x40   : > { %s196_s11 = scalar_lea.vmem [#allocation2], %s732_s5  ;;  %s734_s18 = sshll.u32 %s201_s15, 7 }
  0x41   : > { %s204_s30 = sshll.u32 %s196_s11, 4  ;;  %s1574_s27 = smov (%p36_p6, %s1572_s27), 0  ;;  %s1291_s30 = int_to_ptr.vmem [resolvable:$true] %s204_s30 }
  0x42   : > { %1543 = sst [smem:[#allocation16_spill]] %s1574_s27  ;;  %s38_s14 = ssub.s32 %s1114_s24, %s1574_s27 }
  0x43   : > { %s1298_s25 = scalar_lea.hbm %s1508_s0, %s734_s18  ;;  %s40_s8 = sor.u32 %s39_s12, %s38_s14 }
  0x44   : > { %p137_p10 = scmp.eq.s32.totalorder %s38_s14, 0  ;;  %p41_p12 = scmp.eq.s32.totalorder %s40_s8, 0 }
  0x45   : > { %s1544_s5 = sadd.s32 1, %s1086_s17  ;;  %s1545_s26 = sadd.s32 1, %s1098_s20 }
  0x46   : > { %s1303_s11 = scalar_select %p137_p10, %s1086_s17, %s1544_s5  }
  0x47   : > { %s1308_s15 = scalar_select %p41_p12, %s1098_s20, %s1545_s26  }
  0x48   : > { %s1310_s23 = scalar_lea.sflag [#allocation3], %s192_s10  ;;  %s962_s27 = scalar_lea.hbm %s1298_s25, 256 }
  0x49   : > { %p963_p0 = scmp.ne.s32.totalorder %s1298_s25, %s962_s27  ;;  %p1546_p5 = scmp.ne.s32.totalorder %s1540_s13, 0 }
  0x4a   : > { %s967_s14 = scalar_lea.hbm %s1508_s0, 1024  ;;  %p968_p11 = scmp.lt.u32.totalorder %s1298_s25, %s1508_s0 }
  0x4b   : > { %p964_p7 = pneg %p1546_p5  ;;  %p969_p13 = scmp.lt.u32.totalorder %s967_s14, %s962_s27 }
  0x4c   : > { %p971_p4 = scmp.lt.u32.totalorder %s962_s27, %s1298_s25 }
  0x4d   : > { %p965_p8 = pnand %p964_p7, %p963_p0  ;;  %p970_p1 = por %p969_p13, %p968_p11 }
  0x4f   : > { %p966_p9 = pneg %p965_p8  ;;  %p972_p2 = por %p971_p4, %p970_p1 }
  0x51   : > { %p973_p3 = pnand %p972_p2, %p966_p9 }
  0x53   : > { %976 = shalt.err (!%p973_p3)
}
  0x54   : > { %s977_s26 = scalar_lea.vmem %s1291_s30, 256  ;;  %s1123_s10 = smov [#allocation2]  }
  0x55   : > { %p978_p6 = scmp.ne.s32.totalorder %s1291_s30, %s977_s26  ;;  %s982_s8 = sshll.u32 %s1123_s10, 4  ;;  %s983_s8 = int_to_ptr.vmem [resolvable:$false] %s982_s8 }
  0x56   : > { %s984_s5 = scalar_lea.vmem %s983_s8, 512  ;;  %p985_p0 = scmp.lt.s32.totalorder %s1291_s30, %s983_s8 }
  0x57   : > { %p980_p10 = pnand %p978_p6, %p964_p7  ;;  %p986_p8 = scmp.lt.s32.totalorder %s984_s5, %s977_s26 }
  0x59   : > { %p981_p12 = pneg %p980_p10  ;;  %p987_p11 = por %p986_p8, %p985_p0 }
  0x5b   : > { %p988_p13 = pnand %p987_p11, %p981_p12 }
  0x5d   : > { %991 = shalt.err (!%p988_p13)
}
  0x5e   : > { %s1124_s27 = smov 256   ;;  %s1547_s1 = smov 8  }
  0x5f   : > { %s1548_s28 = smov 128   ;;  %p1549_p7 = scmp.ne.s32.totalorder %s1538_s9, 0 }
  0x60   : > { %831 = dma.hbm_to_vmem [thread:$0]  (!%p1546_p5), %s1298_s25, 256, %s1291_s30, %s1310_s23, %s1124_s27, %s1548_s28, %s1547_s1  }
  0x61   : > { %216 = sbr.rel (%p1549_p7) target bundleno = 573 (0x23d), region = 32  ;;  %s218_s14 = sand.u32 (!%p1549_p7), 1, %s1094_s19  }
  0x62   : > { %s736_s12 = sshll.u32 (!%p1549_p7), %s218_s14, 4  ;;  %s219_s18 = scalar_lea.sflag (!%p1549_p7), [#allocation3], %s218_s14 }
  0x63   : > { %s222_s26 = scalar_lea.vmem (!%p1549_p7), [#allocation2], %s736_s12  ;;  %p1550_p9 = scmp.ne.s32.totalorder (!%p1549_p7), %s1534_s6, 0 }
  0x68   : > { %1065 = dma.done.wait (%p1550_p9), %s219_s18, 256  }
  0x69   : > { %1067 = vsyncadd (%p1550_p9), %s219_s18, 4294967040  ;;  %p1551_p1 = scmp.ne.s32.totalorder %s1532_s29, 0 }
  0x6b   : > { %1069 = dma.done.wait (%p1551_p1), [#allocation6], 256  }
  0x6c   : > { %1071 = vsyncadd (%p1551_p1), [#allocation6], 4294967040  ;;  %v270_v0 = vld [vmem:[%s222_s26] sm:$0xff]  ;;  %s257_s23 = sand.u32 1, %s1082_s16   ;;  %v273_v2 = vld [vmem:[#allocation5 + $0x8] sm:$0xff]  ;;  %vm313_vm0 = vcmask 130048  }
  0x6d   : > { %v272_v1 = vld [vmem:[#allocation5] sm:$0xff]  ;;  %281 = vxpose.xlu0.b32.start [1/2] (short) %v270_v0, 128  ;;  %v271_v3 = vld [vmem:[%s222_s26 + $0x8] sm:$0xff]  ;;  %s1354_s25 = sshll.u32 %s257_s23, 3  ;;  %s739_s29 = sshll.u32 %s1102_s21, 4  ;;  %vm507_vm1 = vcmask 523264  }
  0x6e   : > { %v810_v4 = vpack.c.bf16 %v273_v2, %v272_v1  ;;  %p261_p5 = scmp.lt.s32.totalorder %s1106_s22, 1  ;;  %p263_p4 = scmp.lt.s32.totalorder %s739_s29, 31  ;;  %v742_v21 = vld [vmem:[%s1510_s2] ss:$0 sm:$0xff] }
  0x6f   : > { %s1416_s28 = scalar_lea.vmem [#allocation7], %s1354_s25  ;;  %p759_p2 = scmp.ne.s32.totalorder %s1102_s21, 0 }
  0x70   : > { %811 = vmatprep.subr.bf16.mxu0 %v810_v4  ;;  %814 = vmatprep.subr.bf16.mxu1 %v810_v4  ;;  %s262_s6 = scalar_select %p261_p5, %s1106_s22, 1 }
  0x71   : > { %282 = vxpose.xlu0.b32.end [2/2] (short) %v271_v3, 128  ;;  %813 = vmatpush3.bf16.msra.mxu0 %v810_v4  ;;  %s1576_s29 = smov (!%p263_p4, %s739_s29), 31  ;;  %v1125_v54 = vmov (!%p759_p2), 0.0  }
  0x72   : > { %815 = vmatpush3.bf16.msra.mxu1 %v810_v4  ;;  %s740_s9 = sshll.u32 %s262_s6, 5  ;;  %528 = vst.msk [vmem:[%s1416_s28] sm:$0xff] (!%p759_p2), %vm507_vm1, %v1125_v54 }
  0x73   : > { %s266_s13 = sadd.s32 %s740_s9, %s1576_s29 }
  0x74   : > { %s741_s30 = sshll.u32 %s266_s13, 3 }
  0x75   : > { %s1381_s1 = scalar_lea.vmem %s1511_s3, %s741_s30 }
  0xed   : > { %v297_v5 = vpop.trf.xlu0 }
  0xee   : > { %786 = vmatprep.mubr.msk.f32.mxu0 %vm313_vm0, %v297_v5 }
  0xf1   : > { %v298_v6 = vpop.trf.xlu0 }
  0xf2   : > { %787 = vmatmul.mubr.msk.f32.vlgmr.msra.gmra.mrb[0].mxu0 %vm313_vm0, %v298_v6 }
  0xf5   : > { %v299_v7 = vpop.trf.xlu0 }
  0xf6   : > { %789 = vmatprep.mubr.msk.f32.mxu0 %vm313_vm0, %v299_v7 }
  0xf9   : > { %v300_v8 = vpop.trf.xlu0 }
  0xfa   : > { %790 = vmatmul.mubr.msk.f32.gmra.mrb[2].mxu0 %vm313_vm0, %v300_v8 }
  0xfd   : > { %v301_v9 = vpop.trf.xlu0 }
  0xfe   : > { %792 = vmatprep.mubr.msk.f32.mxu0 %vm313_vm0, %v301_v9 }
 0x101   : > { %v302_v10 = vpop.trf.xlu0 }
 0x102   : > { %793 = vmatmul.mubr.msk.f32.gmra.mrb[4].mxu0 %vm313_vm0, %v302_v10 }
 0x105   : > { %v303_v11 = vpop.trf.xlu0 }
 0x106   : > { %795 = vmatprep.mubr.msk.f32.mxu0 %vm313_vm0, %v303_v11 }
 0x109   : > { %v304_v12 = vpop.trf.xlu0 }
 0x10a   : > { %796 = vmatmul.mubr.msk.f32.gmra.mrb[6].mxu0 %vm313_vm0, %v304_v12 }
 0x10d   : > { %v305_v13 = vpop.trf.xlu0 }
 0x10e   : > { %798 = vmatprep.mubr.msk.f32.mxu1 %vm313_vm0, %v305_v13 }
 0x111   : > { %v306_v14 = vpop.trf.xlu0 }
 0x112   : > { %799 = vmatmul.mubr.msk.f32.vlgmr.msra.gmra.mrb[0].mxu1 %vm313_vm0, %v306_v14 }
 0x115   : > { %v307_v15 = vpop.trf.xlu0 }
 0x116   : > { %801 = vmatprep.mubr.msk.f32.mxu1 %vm313_vm0, %v307_v15 }
 0x119   : > { %v308_v16 = vpop.trf.xlu0 }
 0x11a   : > { %802 = vmatmul.mubr.msk.f32.gmra.mrb[2].mxu1 %vm313_vm0, %v308_v16 }
 0x11d   : > { %v309_v17 = vpop.trf.xlu0 }
 0x11e   : > { %804 = vmatprep.mubr.msk.f32.mxu1 %vm313_vm0, %v309_v17 }
 0x121   : > { %v310_v18 = vpop.trf.xlu0 }
 0x122   : > { %805 = vmatmul.mubr.msk.f32.gmra.mrb[4].mxu1 %vm313_vm0, %v310_v18 }
 0x125   : > { %v311_v19 = vpop.trf.xlu0 }
 0x126   : > { %807 = vmatprep.mubr.msk.f32.mxu1 %vm313_vm0, %v311_v19 }
 0x129   : > { %v312_v20 = vpop.trf.xlu0 }
 0x12a   : > { %808 = vmatmul.mubr.msk.f32.gmra.mrb[6].mxu1 %vm313_vm0, %v312_v20 }
 0x1c5   : > { %v788_v22 = vpop.f32.mrb[0].mxu0 }
 0x1c6   : > { %v434_v23 = vadd.f32 %v788_v22, %v742_v21  ;;  %v428_v24 = vpop.f32.mrb[1].mxu0 }
 0x1c7   : > { %v429_v25 = vadd.f32 %v742_v21, %v428_v24 }
 0x1c8   : > { %509 = vst.msk [vmem:[%s1381_s1 + $0x8] sm:$0xff] %vm507_vm1, %v434_v23 }
 0x1c9   : > { %508 = vst.msk [vmem:[%s1381_s1] sm:$0xff] %vm507_vm1, %v429_v25 }
 0x1cd   : > { %v791_v26 = vpop.f32.mrb[2].mxu0 }
 0x1ce   : > { %v444_v27 = vadd.f32 %v791_v26, %v742_v21  ;;  %v438_v28 = vpop.f32.mrb[3].mxu0 }
 0x1cf   : > { %v439_v29 = vadd.f32 %v742_v21, %v438_v28 }
 0x1d0   : > { %511 = vst.msk [vmem:[%s1381_s1 + $0x18] sm:$0xff] %vm507_vm1, %v444_v27 }
 0x1d1   : > { %510 = vst.msk [vmem:[%s1381_s1 + $0x10] sm:$0xff] %vm507_vm1, %v439_v29 }
 0x1d5   : > { %v794_v30 = vpop.f32.mrb[4].mxu0 }
 0x1d6   : > { %v454_v31 = vadd.f32 %v794_v30, %v742_v21  ;;  %v448_v32 = vpop.f32.mrb[5].mxu0 }
 0x1d7   : > { %v449_v33 = vadd.f32 %v742_v21, %v448_v32 }
 0x1d8   : > { %513 = vst.msk [vmem:[%s1381_s1 + $0x28] sm:$0xff] %vm507_vm1, %v454_v31 }
 0x1d9   : > { %512 = vst.msk [vmem:[%s1381_s1 + $0x20] sm:$0xff] %vm507_vm1, %v449_v33 }
 0x1dd   : > { %v797_v34 = vpop.f32.mrb[6].mxu0 }
 0x1de   : > { %v464_v35 = vadd.f32 %v797_v34, %v742_v21  ;;  %v458_v36 = vpop.f32.mrb[7].mxu0 }
 0x1df   : > { %v459_v37 = vadd.f32 %v742_v21, %v458_v36 }
 0x1e0   : > { %515 = vst.msk [vmem:[%s1381_s1 + $0x38] sm:$0xff] %vm507_vm1, %v464_v35 }
 0x1e1   : > { %514 = vst.msk [vmem:[%s1381_s1 + $0x30] sm:$0xff] %vm507_vm1, %v459_v37 }
 0x1e5   : > { %v800_v38 = vpop.f32.mrb[0].mxu1 }
 0x1e6   : > { %v474_v39 = vadd.f32 %v800_v38, %v742_v21  ;;  %v468_v40 = vpop.f32.mrb[1].mxu1 }
 0x1e7   : > { %v469_v41 = vadd.f32 %v742_v21, %v468_v40 }
 0x1e8   : > { %517 = vst.msk [vmem:[%s1381_s1 + $0x48] sm:$0xff] %vm507_vm1, %v474_v39 }
 0x1e9   : > { %516 = vst.msk [vmem:[%s1381_s1 + $0x40] sm:$0xff] %vm507_vm1, %v469_v41 }
 0x1ed   : > { %v803_v42 = vpop.f32.mrb[2].mxu1 }
 0x1ee   : > { %v484_v43 = vadd.f32 %v803_v42, %v742_v21  ;;  %v478_v44 = vpop.f32.mrb[3].mxu1 }
 0x1ef   : > { %v479_v45 = vadd.f32 %v742_v21, %v478_v44 }
 0x1f0   : > { %519 = vst.msk [vmem:[%s1381_s1 + $0x58] sm:$0xff] %vm507_vm1, %v484_v43 }
 0x1f1   : > { %518 = vst.msk [vmem:[%s1381_s1 + $0x50] sm:$0xff] %vm507_vm1, %v479_v45 }
 0x1f5   : > { %v806_v46 = vpop.f32.mrb[4].mxu1 }
 0x1f6   : > { %v494_v47 = vadd.f32 %v806_v46, %v742_v21  ;;  %v488_v48 = vpop.f32.mrb[5].mxu1 }
 0x1f7   : > { %v489_v49 = vadd.f32 %v742_v21, %v488_v48 }
 0x1f8   : > { %521 = vst.msk [vmem:[%s1381_s1 + $0x68] sm:$0xff] %vm507_vm1, %v494_v47 }
 0x1f9   : > { %520 = vst.msk [vmem:[%s1381_s1 + $0x60] sm:$0xff] %vm507_vm1, %v489_v49 }
 0x1fb   : > { %527 = sbr.rel (%p759_p2) target bundleno = 514 (0x202), region = 44 }
 0x1fd   : > { %v809_v50 = vpop.f32.mrb[6].mxu1 }
 0x1fe   : > { %v504_v51 = vadd.f32 %v809_v50, %v742_v21  ;;  %v498_v52 = vpop.f32.mrb[7].mxu1 }
 0x1ff   : > { %v499_v53 = vadd.f32 %v742_v21, %v498_v52 }
 0x200   : > { %523 = vst.msk [vmem:[%s1381_s1 + $0x78] sm:$0xff] %vm507_vm1, %v504_v51 }
 0x201   : > { %522 = vst.msk [vmem:[%s1381_s1 + $0x70] sm:$0xff] %vm507_vm1, %v499_v53 }
 0x202 PF: > { %v530_v55 = vsel %vm507_vm1, %v429_v25, 0.0  ;;  %v531_v56 = vsel %vm507_vm1, %v434_v23, 0.0  ;;  %v533_v57 = vsel %vm507_vm1, %v439_v29, 0.0  ;;  %v535_v59 = vsel %vm507_vm1, %v444_v27, 0.0  ;;  %v529_v27 = vld [vmem:[%s1416_s28] sm:$0x1] }
 0x203   : > { %v532_v58 = vadd.f32 %v531_v56, %v530_v55  ;;  %v537_v61 = vsel %vm507_vm1, %v449_v33, 0.0  ;;  %v539_v63 = vsel %vm507_vm1, %v454_v31, 0.0  ;;  %v541_v1 = vsel %vm507_vm1, %v459_v37, 0.0  ;;  %s761_s21 = sshll.u32 %s1106_s22, 7  ;;  %s597_s14 = sshll.u32 %s1416_s28, 4  ;;  %s1445_s14 = int_to_ptr.vmem [resolvable:$true] %s597_s14 }
 0x204   : > { %v543_v3 = vsel %vm507_vm1, %v464_v35, 0.0  ;;  %v545_v5 = vsel %vm507_vm1, %v469_v41, 0.0  ;;  %v547_v7 = vsel %vm507_vm1, %v474_v39, 0.0  ;;  %v549_v9 = vsel %vm507_vm1, %v479_v45, 0.0  ;;  %s1443_s26 = scalar_lea.hbm %s1512_s4, %s761_s21  ;;  %s580_s25 = scalar_lea.sflag [#allocation4], %s257_s23 }
 0x205   : > { %v534_v60 = vadd.f32 %v533_v57, %v532_v58  ;;  %v551_v11 = vsel %vm507_vm1, %v484_v43, 0.0  ;;  %v553_v13 = vsel %vm507_vm1, %v489_v49, 0.0  ;;  %v555_v15 = vsel %vm507_vm1, %v494_v47, 0.0  ;;  %s992_s29 = scalar_lea.vmem %s1445_s14, 128  ;;  %p1552_p6 = scmp.ne.s32.totalorder %s1535_s7, 0 }
 0x206   : > { %v557_v17 = vsel %vm507_vm1, %v499_v53, 0.0  ;;  %v559_v19 = vsel %vm507_vm1, %v504_v51, 0.0  ;;  %vm568_vm2 = vcmask 516096   ;;  %p993_p3 = scmp.ne.s32.totalorder %s1445_s14, %s992_s29  ;;  %s1126_s22 = smov [#allocation7]  }
 0x207   : > { %v536_v62 = vadd.f32 %v535_v59, %v534_v60  ;;  %s996_s6 = sshll.u32 %s1126_s22, 4  ;;  %s997_s6 = int_to_ptr.vmem [resolvable:$false] %s996_s6 }
 0x208   : > { %p994_p10 = pnand %p993_p3, %p1552_p6  ;;  %s998_s9 = scalar_lea.vmem %s997_s6, 256 }
 0x209   : > { %v538_v0 = vadd.f32 %v537_v61, %v536_v62  ;;  %p999_p0 = scmp.lt.s32.totalorder %s1445_s14, %s997_s6  ;;  %p1000_p8 = scmp.lt.s32.totalorder %s998_s9, %s992_s29 }
 0x20a   : > { %p995_p12 = pneg %p994_p10 }
 0x20b   : > { %v540_v2 = vadd.f32 %v539_v63, %v538_v0  ;;  %p1001_p11 = por %p1000_p8, %p999_p0 }
 0x20d   : > { %v542_v4 = vadd.f32 %v541_v1, %v540_v2  ;;  %p1002_p13 = pnand %p1001_p11, %p995_p12 }
 0x20f   : > { %v544_v6 = vadd.f32 %v543_v3, %v542_v4 }
 0x211   : > { %v546_v8 = vadd.f32 %v545_v5, %v544_v6 }
 0x213   : > { %v548_v10 = vadd.f32 %v547_v7, %v546_v8 }
 0x215   : > { %v550_v12 = vadd.f32 %v549_v9, %v548_v10 }
 0x217   : > { %v552_v14 = vadd.f32 %v551_v11, %v550_v12 }
 0x219   : > { %v554_v16 = vadd.f32 %v553_v13, %v552_v14 }
 0x21b   : > { %v556_v18 = vadd.f32 %v555_v15, %v554_v16 }
 0x21d   : > { %v558_v20 = vadd.f32 %v557_v17, %v556_v18 }
 0x21f   : > { %v560_v21 = vadd.f32 %v559_v19, %v558_v20 }
 0x221   : > { %v561_v22 = vrot.slane %v560_v21, 4 }
 0x223   : > { %v562_v23 = vadd.f32 %v561_v22, %v560_v21 }
 0x225   : > { %v563_v24 = vrot.slane %v562_v23, 2 }
 0x227   : > { %v564_v25 = vadd.f32 %v563_v24, %v562_v23 }
 0x229   : > { %v565_v26 = vrot.slane %v564_v25, 1 }
 0x22b   : > { %v566_v28 = vadd.f32 %v565_v26, %v564_v25 }
 0x22d   : > { %v567_v29 = vadd.f32 %v566_v28, %v529_v27 }
 0x22f   : > { %569 = vst.msk [vmem:[%s1416_s28] sm:$0x1] %vm568_vm2, %v567_v29 }
 0x230   : > { %1005 = shalt.err (!%p1002_p13)
}
 0x231   : > { %s1006_s23 = scalar_lea.hbm %s1443_s26, 128  ;;  %s1010_s10 = scalar_lea.hbm %s1512_s4, 256 }
 0x232   : > { %p1007_p7 = scmp.ne.s32.totalorder %s1443_s26, %s1006_s23  ;;  %p1011_p5 = scmp.lt.u32.totalorder %s1443_s26, %s1512_s4 }
 0x233   : > { %p1012_p4 = scmp.lt.u32.totalorder %s1010_s10, %s1006_s23  ;;  %p1014_p3 = scmp.lt.u32.totalorder %s1006_s23, %s1443_s26 }
 0x234   : > { %p1008_p9 = pnand %p1007_p7, %p1552_p6 }
 0x235   : > { %p1013_p2 = por %p1012_p4, %p1011_p5 }
 0x236   : > { %p1009_p1 = pneg %p1008_p9 }
 0x237   : > { %p1015_p10 = por %p1014_p3, %p1013_p2 }
 0x239   : > { %p1016_p12 = pnand %p1015_p10, %p1009_p1 }
 0x23b   : > { %1019 = shalt.err (!%p1016_p12)
}
 0x23c   : > { %822 = dma.vmem_to_hbm [thread:$0]  (%p1552_p6), %s1445_s14, 128, %s1443_s26, %s580_s25  }
 0x23d PF: > { %s1553_s27 = sld [smem:[#allocation13_spill]]  ;;  %s1554_s1 = sld [smem:[#allocation11_spill]] }
 0x23e   : > { %s1555_s28 = sld [smem:[#allocation14_spill]] }
 0x243   : > { %p839_p0 = scmp.ge.s32.totalorder %s1553_s27, 2  ;;  %s621_s21 = sand.u32 1, %s1554_s1  }
 0x244   : > { %p1556_p8 = scmp.ne.s32.totalorder %s1555_s28, 0  ;;  %s622_s12 = scalar_lea.sflag [#allocation4], %s621_s21 }
 0x246   : > { %p833_p11 = pnand %p839_p0, %p1556_p8 }
 0x248   : > { %1073 = dma.done.wait (!%p833_p11), %s622_s12, 128  }
 0x249   : > { %1075 = vsyncadd (!%p833_p11), %s622_s12, 4294967168  ;;  %s22_s25 = sadd.s32 1, %s1553_s27   ;;  %s1557_s7 = smov %s1308_s15 }
 0x24a   : > { %p19_p13 = scmp.ge.s32.totalorder %s22_s25, 6   ;;  %s1558_s21 = sld [smem:[#allocation12_spill]] }
 0x24b   : > { %s1559_s23 = sld [smem:[#allocation15_spill]]  ;;  %s1560_s14 = sld [smem:[#allocation16_spill]] }
 0x24c   : > { %s1561_s15 = smov %s1082_s16  ;;  %s1562_s16 = smov %s1086_s17 }
 0x24d   : > { %s1563_s17 = smov %s1303_s11  ;;  %s1564_s18 = smov %s1094_s19 }
 0x24e   : > { %s1565_s19 = smov %s1098_s20  ;;  %s1566_s20 = smov %s1557_s7 }
 0x24f   : > { %s1567_s22 = smov %s1114_s24  ;;  %21 = sbr.rel (!%p19_p13) target bundleno = 12 (0xc), region = 97 }
 0x251   : > { %s1568_s24 = smov %s1560_s14 }
 0x256   :  { %627 = vsyncpa [#allocation3], 1 }
 0x257   :  { %629 = vsyncpa [#allocation3 + $0x1], 1 }
 0x258   :  { %630 = vsyncpa [#allocation6], 1 }
 0x259   :  { %631 = vsyncpa [#allocation4], 1 }
 0x25a   :  { %633 = vsyncpa [#allocation4 + $0x1], 1 }

</bundles_post_ra>
